<compile_context>
chip_gen: v6e
topology: v6e:2x2x1
jax: 0.10.0
libtpu: 0.0.40
codegen_flags: <defaults>
</compile_context>

<pallas_src>
import functools
import math

import jax
import jax.numpy as jnp
from jax.experimental import pallas as pl
from jax.experimental.pallas import tpu as pltpu

_TARGET_BLOCK_BYTES = 4 * 1024 * 1024      # ~4 MiB per block (overhead-amortized)
_MAX_BLOCK_BYTES = 16 * 1024 * 1024        # safety valve for pathological layouts
_VMEM_LIMIT_BYTES = 32 * 1024 * 1024       # explicit: v5e scoped default is only 16 MiB
_FAST_PATH_MAX_ELEMS = 64 * 1024           # below this, plain XLA beats a kernel launch
_LANE_CANDIDATES = (1024, 512, 256, 128)

# Flipped to True the first time the "fast" compiler params (CORE_PARALLEL +
# allow_input_fusion) fail to lower on the current chip / JAX build.
_SAFE_COMPILE_MODE = False


def _qdq_kernel(x_ref, o_ref, *, n_levels):
    x = x_ref[...].astype(jnp.float32)
    # x / scale == x * n_levels exactly (power-of-two scale) -> pure VPU work.
    q = jnp.clip(jnp.round(x * float(n_levels)), 0.0, float(n_levels - 1))
    o_ref[...] = (q * (1.0 / n_levels)).astype(o_ref.dtype)


def _reference_forward(x, *, n_bits=8):
    """Pure-jnp reference (also used as the tiny-input fast path)."""
    n_levels = 2 ** n_bits
    scale = 1.0 / n_levels
    q = jnp.clip(jnp.round(x.astype(jnp.float32) / scale), 0.0, float(n_levels - 1))
    return (q * scale).astype(x.dtype)


def _choose_layout(shape):
    """Pick a copy-free 2-D view (rows, lane) of the tensor.

    Preferred: lane a multiple of 128 that divides the element count exactly
    (unmasked, lane-dense stores).  Fallback: the tensor's natural
    (prod(leading), last) view — still no padding / extra HBM passes, at the
    cost of masked partial stores when last % 128 != 0.
    """
    total = math.prod(shape) if shape else 1
    for lane in _LANE_CANDIDATES:
        if total % lane == 0:
            return total // lane, lane
    if len(shape) >= 2:
        return math.prod(shape[:-1]), shape[-1]
    return 1, total


def _row_tile(rows, lane, itemsize):
    """Byte-targeted, dtype-aware row tile (multiple of the sublane packing)."""
    pack = 8 * max(1, 4 // itemsize)          # f32 -> 8, bf16 -> 16, int8 -> 32
    tr = _TARGET_BLOCK_BYTES // (lane * itemsize)
    tr = max((tr // pack) * pack, pack)
    return rows if tr >= rows else tr


def _compiler_params(safe):
    if safe:
        return pltpu.CompilerParams(
            dimension_semantics=("arbitrary",),
            vmem_limit_bytes=_VMEM_LIMIT_BYTES,
        )
    return pltpu.CompilerParams(
        # CORE_PARALLEL actually shards the grid across v7x's two TensorCores
        # (plain "parallel" does not change codegen); harmless on 1-TC chips.
        dimension_semantics=(pltpu.CORE_PARALLEL,),
        # Let XLA fuse the reshape producer into the kernel's input DMA.
        allow_input_fusion=[True],
        vmem_limit_bytes=_VMEM_LIMIT_BYTES,
    )


def _pallas_qdq(x2, tr, n_levels, out_dtype, safe):
    rows, lane = x2.shape
    in_bytes = rows * lane * x2.dtype.itemsize
    out_bytes = rows * lane * jnp.dtype(out_dtype).itemsize
    return pl.pallas_call(
        functools.partial(_qdq_kernel, n_levels=n_levels),
        out_shape=jax.ShapeDtypeStruct((rows, lane), out_dtype),
        grid_spec=pltpu.PrefetchScalarGridSpec(
            num_scalar_prefetch=0,
            grid=(pl.cdiv(rows, tr),),
            in_specs=[pl.BlockSpec((tr, lane), lambda i: (i, 0))],
            out_specs=pl.BlockSpec((tr, lane), lambda i: (i, 0)),
        ),
        compiler_params=_compiler_params(safe),
        cost_estimate=pl.CostEstimate(
            flops=4 * rows * lane,
            bytes_accessed=in_bytes + out_bytes,
            transcendentals=0,
        ),
    )(x2)


def act_static_scale_quantize(x, *, n_bits=8, out_dtype=None, force_pallas=False):
    """Pallas forward pass of ActStaticScaleQuantizer for any input shape.

    out_dtype: optional output dtype override (e.g. bf16 for f32 input — exact,
    since dequant values are k / 2**n_bits).  Defaults to x.dtype to match the
    PyTorch module's contract.
    """
    global _SAFE_COMPILE_MODE

    n_levels = 2 ** n_bits
    out_dtype = x.dtype if out_dtype is None else jnp.dtype(out_dtype)
    total = x.size

    if total == 0:
        return x.astype(out_dtype)

    # Tiny inputs: kernel launch + pipeline overhead dominates; plain XLA wins.
    if total < _FAST_PATH_MAX_ELEMS and not force_pallas:
        return _reference_forward(x, n_bits=n_bits).astype(out_dtype)

    rows, lane = _choose_layout(x.shape)
    itemsize = jnp.dtype(x.dtype).itemsize
    tr = _row_tile(rows, lane, itemsize)

    # Safety valve: a layout we cannot tile under the VMEM budget (e.g. a huge
    # 1-D tensor whose length isn't a multiple of 128) -> plain XLA.
    if tr * lane * itemsize > _MAX_BLOCK_BYTES:
        return _reference_forward(x, n_bits=n_bits).astype(out_dtype)

    x2 = x.reshape(rows, lane)        # contiguous view; no extra HBM pass

    out2 = None
    if not _SAFE_COMPILE_MODE:
        try:
            out2 = _pallas_qdq(x2, tr, n_levels, out_dtype, safe=False)
        except Exception:
            # CORE_PARALLEL / allow_input_fusion unsupported here; fall back.
            _SAFE_COMPILE_MODE = True
    if out2 is None:
        out2 = _pallas_qdq(x2, tr, n_levels, out_dtype, safe=True)

    return out2.reshape(x.shape)


if __name__ == "__main__":
    key = jax.random.PRNGKey(0)

    # Activation "after softmax": (batch=2, heads=4, seq=16, seq=16).
    logits = jax.random.normal(key, (2, 4, 16, 16), dtype=jnp.float32)
    x = jax.nn.softmax(logits, axis=-1)

    out = jax.block_until_ready(act_static_scale_quantize(x, force_pallas=True))
    ref = _reference_forward(x)
    assert out.shape == x.shape and out.dtype == x.dtype
    assert jnp.allclose(out, ref, atol=1e-6, rtol=1e-6), "mismatch vs reference (main)"

    # Fast path (no pallas_call) must agree numerically.
    out_fast = jax.block_until_ready(act_static_scale_quantize(x))
    assert jnp.allclose(out_fast, ref, atol=1e-6, rtol=1e-6), "fast-path mismatch"

    # Ragged row count with lane-dense layout: exercises cdiv grid + partial last block.
    x2 = jax.random.normal(jax.random.PRNGKey(1), (2080, 1024), dtype=jnp.float32) * 1.5
    out2 = jax.block_until_ready(act_static_scale_quantize(x2, force_pallas=True))
    assert jnp.allclose(out2, _reference_forward(x2), atol=1e-6, rtol=1e-6), "ragged mismatch"

    # bf16 input (dtype-aware tile sizing; k/256 is exactly representable in bf16).
    x3 = jax.nn.softmax(
        jax.random.normal(jax.random.PRNGKey(2), (4, 8, 128, 128), dtype=jnp.float32),
        axis=-1,
    ).astype(jnp.bfloat16)
    out3 = jax.block_until_ready(act_static_scale_quantize(x3, force_pallas=True))
    assert out3.dtype == jnp.bfloat16
    assert jnp.allclose(out3.astype(jnp.float32),
                        _reference_forward(x3).astype(jnp.float32), atol=2e-3), "bf16 mismatch"

    # Total not a multiple of 128: natural 2-D view (no pad / slice copies),
    # also hits both clamp edges via negative and >1 inputs.
    x4 = jax.random.normal(jax.random.PRNGKey(3), (3, 5, 7), dtype=jnp.float32) * 2.0
    out4 = jax.block_until_ready(act_static_scale_quantize(x4, force_pallas=True))
    assert jnp.allclose(out4, _reference_forward(x4), atol=1e-6, rtol=1e-6), "fallback mismatch"

    print("KERNEL_OK")
</pallas_src>

<mosaic_0001>
module attributes {stable_mosaic.version = 11 : i64} {
  func.func @_qdq_kernel(%arg0: i32, %arg1: memref<2x1024xf32, #tpu.memory_space<vmem>>, %arg2: memref<2x1024xf32, #tpu.memory_space<vmem>>) attributes {dimension_semantics = [#tpu.dimension_semantics<core_parallel>], iteration_bounds = array<i64: 1>, scalar_prefetch = 0 : i64, scratch_operands = 0 : i64, tpu.core_type = #tpu.core_type<tc>, window_params = [{transform_indices = @transform_0, window_bounds = array<i64: 2, 1024>}, {transform_indices = @transform_1, window_bounds = array<i64: 2, 1024>}]} {
    %c0 = arith.constant 0 : index
    %c0_0 = arith.constant 0 : index
    %0 = vector.load %arg1[%c0, %c0_0] : memref<2x1024xf32, #tpu.memory_space<vmem>>, vector<2x1024xf32>
    %cst = arith.constant 2.560000e+02 : f32
    %1 = vector.broadcast %cst : f32 to vector<2x1024xf32>
    %2 = arith.mulf %0, %1 : vector<2x1024xf32>
    %3 = math.roundeven %2 : vector<2x1024xf32>
    %cst_1 = arith.constant 0.000000e+00 : f32
    %cst_2 = arith.constant 2.550000e+02 : f32
    %4 = vector.broadcast %cst_1 : f32 to vector<2x1024xf32>
    %5 = arith.maximumf %4, %3 : vector<2x1024xf32>
    %6 = vector.broadcast %cst_2 : f32 to vector<2x1024xf32>
    %7 = arith.minimumf %6, %5 : vector<2x1024xf32>
    %cst_3 = arith.constant 3.906250e-03 : f32
    %8 = vector.broadcast %cst_3 : f32 to vector<2x1024xf32>
    %9 = arith.mulf %7, %8 : vector<2x1024xf32>
    %c0_4 = arith.constant 0 : index
    %c0_5 = arith.constant 0 : index
    %10 = vector.load %arg2[%c0_4, %c0_5] : memref<2x1024xf32, #tpu.memory_space<vmem>>, vector<2x1024xf32>
    tpu.vector_store %arg2[%c0_4, %c0_5], %9 {strides = array<i32>} : memref<2x1024xf32, #tpu.memory_space<vmem>>, vector<2x1024xf32>,
    return
  }
  func.func @transform_0(%arg0: i32) -> (i32, i32) {
    %c0_i32 = arith.constant 0 : i32
    %c0_i32_0 = arith.constant 0 : i32
    return %arg0, %c0_i32 : i32, i32
  }
  func.func @transform_1(%arg0: i32) -> (i32, i32) {
    %c0_i32 = arith.constant 0 : i32
    %c0_i32_0 = arith.constant 0 : i32
    return %arg0, %c0_i32 : i32, i32
  }
}

module attributes {stable_mosaic.version = 11 : i64} {
  func.func @_qdq_kernel(%arg0: i32, %arg1: memref<2x1024xf32, #tpu.memory_space<vmem>>, %arg2: memref<2x1024xf32, #tpu.memory_space<vmem>>) attributes {dimension_semantics = [#tpu.dimension_semantics<arbitrary>], iteration_bounds = array<i64: 1>, scalar_prefetch = 0 : i64, scratch_operands = 0 : i64, tpu.core_type = #tpu.core_type<tc>, window_params = [{transform_indices = @transform_0, window_bounds = array<i64: 2, 1024>}, {transform_indices = @transform_1, window_bounds = array<i64: 2, 1024>}]} {
    %c0 = arith.constant 0 : index
    %c0_0 = arith.constant 0 : index
    %0 = vector.load %arg1[%c0, %c0_0] : memref<2x1024xf32, #tpu.memory_space<vmem>>, vector<2x1024xf32>
    %cst = arith.constant 2.560000e+02 : f32
    %1 = vector.broadcast %cst : f32 to vector<2x1024xf32>
    %2 = arith.mulf %0, %1 : vector<2x1024xf32>
    %3 = math.roundeven %2 : vector<2x1024xf32>
    %cst_1 = arith.constant 0.000000e+00 : f32
    %cst_2 = arith.constant 2.550000e+02 : f32
    %4 = vector.broadcast %cst_1 : f32 to vector<2x1024xf32>
    %5 = arith.maximumf %4, %3 : vector<2x1024xf32>
    %6 = vector.broadcast %cst_2 : f32 to vector<2x1024xf32>
    %7 = arith.minimumf %6, %5 : vector<2x1024xf32>
    %cst_3 = arith.constant 3.906250e-03 : f32
    %8 = vector.broadcast %cst_3 : f32 to vector<2x1024xf32>
    %9 = arith.mulf %7, %8 : vector<2x1024xf32>
    %c0_4 = arith.constant 0 : index
    %c0_5 = arith.constant 0 : index
    %10 = vector.load %arg2[%c0_4, %c0_5] : memref<2x1024xf32, #tpu.memory_space<vmem>>, vector<2x1024xf32>
    tpu.vector_store %arg2[%c0_4, %c0_5], %9 {strides = array<i32>} : memref<2x1024xf32, #tpu.memory_space<vmem>>, vector<2x1024xf32>,
    return
  }
  func.func @transform_0(%arg0: i32) -> (i32, i32) {
    %c0_i32 = arith.constant 0 : i32
    %c0_i32_0 = arith.constant 0 : i32
    return %arg0, %c0_i32 : i32, i32
  }
  func.func @transform_1(%arg0: i32) -> (i32, i32) {
    %c0_i32 = arith.constant 0 : i32
    %c0_i32_0 = arith.constant 0 : i32
    return %arg0, %c0_i32 : i32, i32
  }
}

</mosaic_0001>

<bundles_post_ra>
// kernel: tpu_custom_call.1
= control target key start
LH: loop header
LB: loop body
LE: loop exit
PB: predicated region body
PF: predicated region fallthrough
CT: control target
= control target key end

     0   :  { %s144_s6 = sld [smem:[#allocation0]]   ;;  %s163_s0 = inlined_call_operand.hbm [shape: f32[2,1024], index: 0, kind: input, shape index: {}]   ;;  %s164_s1 = inlined_call_operand.hbm [shape: f32[2,1024], index: 1, kind: output, shape index: {}]  }
   0x1   :  { %6 = vsyncpa [#allocation3], 0 }
   0x2   :  { %7 = vsyncpa [#allocation4], 0  ;;  %s132_s11 = smov [#allocation2]   ;;  %s86_s16 = scalar_lea.hbm %s163_s0, 256 }
   0x3   :  { %s17_s12 = sshll.u32 %s132_s11, 4  ;;  %s18_s12 = int_to_ptr.vmem [resolvable:$true] %s17_s12 }
   0x6   :  { %s64_s7 = sshll.u32 %s144_s6, 8 }
   0x7   :  { %s15_s10 = scalar_lea.hbm %s163_s0, %s64_s7 }
   0x8   :  { %s84_s13 = scalar_lea.hbm %s15_s10, 256 }
   0x9   :  { %p85_p0 = scmp.ne.s32.totalorder %s15_s10, %s84_s13  ;;  %p88_p1 = scmp.lt.s32.totalorder %s86_s16, %s84_s13 }
   0xb   :  { %p90_p2 = pnand %p88_p1, %p85_p0 }
   0xd   :  { %93 = shalt.err (!%p90_p2)
}
   0xe   :  { %s94_s17 = scalar_lea.vmem %s18_s12, 256  ;;  %p99_p4 = scmp.lt.s32.totalorder %s18_s12, %s18_s12 }
   0xf   :  { %p95_p3 = scmp.ne.s32.totalorder %s18_s12, %s94_s17  ;;  %p100_p5 = scmp.lt.s32.totalorder %s94_s17, %s94_s17 }
  0x11   :  { %p101_p6 = por %p100_p5, %p99_p4 }
  0x13   :  { %p102_p7 = pnand %p101_p6, %p95_p3 }
  0x15   :  { %105 = shalt.err (!%p102_p7)
}
  0x16   :  { %20 = dma.hbm_to_vmem [thread:$0]  %s15_s10, 256, %s18_s12, [#allocation3]  }
  0x17   :  { %128 = dma.done.wait [#allocation3], 256  }
  0x18   :  { %129 = vsyncadd [#allocation3], 4294967040  ;;  %v24_v0 = vld [vmem:[#allocation2] sm:$0xff]  ;;  %v25_v1 = vld [vmem:[#allocation2 + $0x8] sm:$0xff]  ;;  %s133_s0 = smov [#allocation5]   ;;  %s45_s21 = scalar_lea.hbm %s164_s1, %s64_s7 }
  0x19   :  { %v26_v2 = vmul.f32 256.0, %v24_v0  ;;  %v27_v3 = vmul.f32 256.0, %v25_v1  ;;  %s47_s18 = sshll.u32 %s133_s0, 4  ;;  %s48_s18 = int_to_ptr.vmem [resolvable:$true] %s47_s18 }
  0x1a   :  { %s106_s22 = scalar_lea.vmem %s48_s18, 256  ;;  %p111_p9 = scmp.lt.s32.totalorder %s48_s18, %s48_s18 }
  0x1b   :  { %v68_v4 = vcvt.f32.s32 %v26_v2  ;;  %v66_v5 = vand.u32 2147483647, %v26_v2  ;;  %v76_v6 = vcvt.f32.s32 %v27_v3  ;;  %v71_v8 = vand.u32 2147483648, %v26_v2  ;;  %p107_p8 = scmp.ne.s32.totalorder %s48_s18, %s106_s22  ;;  %p112_p10 = scmp.lt.s32.totalorder %s106_s22, %s106_s22 }
  0x1c   :  { %v74_v9 = vand.u32 2147483647, %v27_v3  ;;  %v79_v11 = vand.u32 2147483648, %v27_v3 }
  0x1d   :  { %v69_v7 = vcvt.s32.f32 %v68_v4  ;;  %v77_v10 = vcvt.s32.f32 %v76_v6  ;;  %vm67_vm0 = vcmp.lt.f32.partialorder %v66_v5, 8388608.0  ;;  %p113_p11 = por %p112_p10, %p111_p9 }
  0x1e   :  { %vm75_vm1 = vcmp.lt.f32.partialorder %v74_v9, 8388608.0 }
  0x1f   :  { %v70_v12 = vand.u32 2147483647, %v69_v7  ;;  %v78_v13 = vand.u32 2147483647, %v77_v10  ;;  %p114_p12 = pnand %p113_p11, %p107_p8 }
  0x21   :  { %v72_v14 = vor.u32 %v71_v8, %v70_v12  ;;  %v80_v15 = vor.u32 %v79_v11, %v78_v13 }
  0x23   :  { %v73_v16 = vsel %vm67_vm0, %v72_v14, %v26_v2  ;;  %v81_v18 = vsel %vm75_vm1, %v80_v15, %v27_v3 }
  0x24   :  { %v30_v17 = vmax.f32 %v73_v16, 0.0  ;;  %v31_v19 = vmax.f32 %v81_v18, 0.0 }
  0x26   :  { %v32_v20 = vmin.f32 %v30_v17, 255.0  ;;  %v33_v21 = vmin.f32 %v31_v19, 255.0 }
  0x28   :  { %v34_v22 = vmul.f32 0.00390625, %v32_v20  ;;  %v35_v23 = vmul.f32 0.00390625, %v33_v21 }
  0x2a   :  { %36 = vst [vmem:[#allocation5] sm:$0xff] %v34_v22  ;;  %37 = vst [vmem:[#allocation5 + $0x8] sm:$0xff] %v35_v23 }
  0x2b   :  { %117 = shalt.err (!%p114_p12)
}
  0x2c   :  { %s118_s23 = scalar_lea.hbm %s45_s21, 256  ;;  %s120_s26 = scalar_lea.hbm %s164_s1, 256 }
  0x2d   :  { %p119_p13 = scmp.ne.s32.totalorder %s45_s21, %s118_s23  ;;  %p122_p0 = scmp.lt.s32.totalorder %s120_s26, %s118_s23 }
  0x2f   :  { %p124_p1 = pnand %p122_p0, %p119_p13 }
  0x31   :  { %127 = shalt.err (!%p124_p1)
}
  0x32   :  { %50 = dma.vmem_to_hbm [thread:$0]  %s48_s18, 256, %s45_s21, [#allocation4]  }
  0x33   :  { %130 = dma.done.wait [#allocation4], 256  }
  0x34   :  { %131 = vsyncadd [#allocation4], 4294967040 }
  0x35   :  { %54 = vsyncpa [#allocation3], 1 }
  0x36   :  { %55 = vsyncpa [#allocation4], 1 }

// kernel: tpu_custom_call.1
= control target key start
LH: loop header
LB: loop body
LE: loop exit
PB: predicated region body
PF: predicated region fallthrough
CT: control target
= control target key end

     0   :  { %6 = vsyncpa [#allocation3], 0  ;;  %s130_s0 = inlined_call_operand.hbm [shape: f32[2,1024], index: 0, kind: input, shape index: {}]   ;;  %s131_s1 = inlined_call_operand.hbm [shape: f32[2,1024], index: 1, kind: output, shape index: {}]  }
   0x1   :  { %7 = vsyncpa [#allocation4], 0  ;;  %s112_s6 = smov [#allocation2]  }
   0x2   :  { %s14_s7 = sshll.u32 %s112_s6, 4  ;;  %s15_s7 = int_to_ptr.vmem [resolvable:$true] %s14_s7 }
   0x3   :  { %s76_s8 = scalar_lea.vmem %s15_s7, 256  ;;  %p81_p1 = scmp.lt.s32.totalorder %s15_s7, %s15_s7 }
   0x4   :  { %p77_p0 = scmp.ne.s32.totalorder %s15_s7, %s76_s8  ;;  %p82_p2 = scmp.lt.s32.totalorder %s76_s8, %s76_s8 }
   0x6   :  { %p83_p3 = por %p82_p2, %p81_p1 }
   0x8   :  { %p84_p4 = pnand %p83_p3, %p77_p0 }
   0xa   :  { %87 = shalt.err (!%p84_p4)
}
   0xb   :  { %17 = dma.hbm_to_vmem [thread:$0]  %s130_s0, 256, %s15_s7, [#allocation3]  }
   0xc   :  { %108 = dma.done.wait [#allocation3], 256  }
   0xd   :  { %109 = vsyncadd [#allocation3], 4294967040  ;;  %v21_v0 = vld [vmem:[#allocation2] sm:$0xff]  ;;  %v22_v1 = vld [vmem:[#allocation2 + $0x8] sm:$0xff]  ;;  %s113_s0 = smov [#allocation5]  }
   0xe   :  { %v23_v2 = vmul.f32 256.0, %v21_v0  ;;  %v24_v3 = vmul.f32 256.0, %v22_v1  ;;  %s41_s11 = sshll.u32 %s113_s0, 4  ;;  %s42_s11 = int_to_ptr.vmem [resolvable:$true] %s41_s11 }
   0xf   :  { %s88_s12 = scalar_lea.vmem %s42_s11, 256  ;;  %p93_p6 = scmp.lt.s32.totalorder %s42_s11, %s42_s11 }
  0x10   :  { %v52_v4 = vcvt.f32.s32 %v23_v2  ;;  %v50_v5 = vand.u32 2147483647, %v23_v2  ;;  %v60_v6 = vcvt.f32.s32 %v24_v3  ;;  %v55_v8 = vand.u32 2147483648, %v23_v2  ;;  %p89_p5 = scmp.ne.s32.totalorder %s42_s11, %s88_s12  ;;  %p94_p7 = scmp.lt.s32.totalorder %s88_s12, %s88_s12 }
  0x11   :  { %v58_v9 = vand.u32 2147483647, %v24_v3  ;;  %v63_v11 = vand.u32 2147483648, %v24_v3 }
  0x12   :  { %v53_v7 = vcvt.s32.f32 %v52_v4  ;;  %v61_v10 = vcvt.s32.f32 %v60_v6  ;;  %vm51_vm0 = vcmp.lt.f32.partialorder %v50_v5, 8388608.0  ;;  %p95_p8 = por %p94_p7, %p93_p6 }
  0x13   :  { %vm59_vm1 = vcmp.lt.f32.partialorder %v58_v9, 8388608.0 }
  0x14   :  { %v54_v12 = vand.u32 2147483647, %v53_v7  ;;  %v62_v13 = vand.u32 2147483647, %v61_v10  ;;  %p96_p9 = pnand %p95_p8, %p89_p5 }
  0x16   :  { %v56_v14 = vor.u32 %v55_v8, %v54_v12  ;;  %v64_v15 = vor.u32 %v63_v11, %v62_v13 }
  0x18   :  { %v57_v16 = vsel %vm51_vm0, %v56_v14, %v23_v2  ;;  %v65_v18 = vsel %vm59_vm1, %v64_v15, %v24_v3 }
  0x19   :  { %v27_v17 = vmax.f32 %v57_v16, 0.0  ;;  %v28_v19 = vmax.f32 %v65_v18, 0.0 }
  0x1b   :  { %v29_v20 = vmin.f32 %v27_v17, 255.0  ;;  %v30_v21 = vmin.f32 %v28_v19, 255.0 }
  0x1d   :  { %v31_v22 = vmul.f32 0.00390625, %v29_v20  ;;  %v32_v23 = vmul.f32 0.00390625, %v30_v21 }
  0x1f   :  { %33 = vst [vmem:[#allocation5] sm:$0xff] %v31_v22  ;;  %34 = vst [vmem:[#allocation5 + $0x8] sm:$0xff] %v32_v23 }
  0x20   :  { %99 = shalt.err (!%p96_p9)
}
  0x21   :  { %44 = dma.vmem_to_hbm [thread:$0]  %s42_s11, 256, %s131_s1, [#allocation4]  }
  0x22   :  { %110 = dma.done.wait [#allocation4], 256  }
  0x23   :  { %111 = vsyncadd [#allocation4], 4294967040 }
  0x24   :  { %48 = vsyncpa [#allocation3], 1 }
  0x25   :  { %49 = vsyncpa [#allocation4], 1 }

</bundles_post_ra>
